<compile_context>
chip_gen: v7x
topology: tpu7x:2x2x1
jax: 0.10.0
libtpu: 0.0.40
codegen_flags: <defaults>
</compile_context>

<pallas_src>
import functools

import jax
import jax.numpy as jnp
from jax.experimental import pallas as pl
from jax.experimental.pallas import tpu as pltpu

BN_EPS = 1e-5
LEAKY_SLOPE = 0.2
HID = 64   # hidden width of every Linear in the MLP
LAT = 32   # latent width


def _round_up(n, m):
    return (n + m - 1) // m * m


# ----------------------------- kernel ------------------------------------- #
def _vae_kernel(x_ref, eps_ref, w_ref, v_ref, out_ref, *, w_offs, in_rows):
    """Whole-batch VAE forward in one invocation.

    x_ref  : (B, in_pad)        input (zero-padded cols to multiple of 8)
    eps_ref: (B, LAT)           reparameterization noise
    w_ref  : (sum(in_rows), W)  packed weights; block i = rows [off_i, off_i+in_rows_i)
    v_ref  : (16, W)            packed biases / BN gamma / BN beta (one per row)
    out_ref: (B, W + 2*LAT)     packed [x_rec (padded to W) | mu | log_var]
    """
    x = x_ref[...].astype(jnp.float32)
    eps = eps_ref[...].astype(jnp.float32)
    vec = v_ref[...].astype(jnp.float32)

    def linear(h, layer):
        r0 = w_offs[layer]
        w = w_ref[r0:r0 + in_rows[layer], :]
        # TODO(synk): cast h/w to bf16 here once batch is large enough to be
        # MXU-visible (irrelevant at B=8, f32 keeps exact parity with torch).
        return jnp.dot(h, w, preferred_element_type=jnp.float32)

    def bn_lrelu(h, b_row, g_row, be_row):
        # h: (B, HID) pre-activation (Linear bias added here, then BN, then LeakyReLU)
        h = h + vec[b_row:b_row + 1, :HID]
        m = jnp.mean(h, axis=0, keepdims=True)
        m2 = jnp.mean(h * h, axis=0, keepdims=True)
        var = jnp.maximum(m2 - m * m, 0.0)            # one-pass biased variance
        g = vec[g_row:g_row + 1, :HID]
        be = vec[be_row:be_row + 1, :HID]
        h = g * (h - m) * jax.lax.rsqrt(var + BN_EPS) + be
        return jnp.maximum(h, LEAKY_SLOPE * h)        # LeakyReLU(0.2)

    def softplus(h):
        # PyTorch Softplus (beta=1, threshold=20): linear above threshold.
        safe = jnp.minimum(h, 20.0)
        return jnp.where(h > 20.0, h, jnp.log1p(jnp.exp(safe)))

    # ---- encoder ----
    h = bn_lrelu(linear(x, 0)[:, :HID], 0, 1, 2)
    h = bn_lrelu(linear(h, 1)[:, :HID], 3, 4, 5)

    # ---- fused latent head: one (HID x 64) matmul gives [mu | log_var] ----
    mulv = linear(h, 2)[:, :2 * LAT] + vec[6:7, :2 * LAT]
    mu = mulv[:, :LAT]
    log_var = mulv[:, LAT:2 * LAT]

    # ---- reparameterize ----
    z = mu + eps * jnp.exp(0.5 * log_var)

    # ---- decoder ----
    d = bn_lrelu(linear(z, 3)[:, :HID], 7, 8, 9)
    d = bn_lrelu(linear(d, 4)[:, :HID], 10, 11, 12)
    x_rec = softplus(linear(d, 5) + vec[13:14, :])    # (B, W); lanes >= out_dim are pad

    # ---- single lane-dense packed store: [x_rec | mu | log_var] ----
    out_ref[...] = jnp.concatenate([x_rec, mulv], axis=-1)


# ----------------------------- packing ------------------------------------- #
def pack_params(params, input_dim, output_dim):
    """Pack the 22 per-layer tensors into two slabs + static layout metadata."""
    (w1, b1, g1, be1, w2, b2, g2, be2, wmu, bmu, wlv, blv,
     w3, b3, g3, be3, w4, b4, g4, be4, w5, b5) = params

    in_pad = _round_up(input_dim, 8)
    wcol = max(HID, _round_up(output_dim, 64))   # lane width of both slabs

    wmulv = jnp.concatenate([wmu, wlv], axis=1)   # (64, 64) fused mu/log_var head
    bmulv = jnp.concatenate([bmu, blv], axis=1)   # (1, 64)

    def pad_w(w, rows):
        r, c = w.shape
        return jnp.pad(w, ((0, rows - r), (0, wcol - c)))

    in_rows = (in_pad, HID, HID, LAT, HID, HID)
    blocks = [pad_w(w1, in_pad), pad_w(w2, HID), pad_w(wmulv, HID),
              pad_w(w3, LAT), pad_w(w4, HID), pad_w(w5, HID)]
    w_offs = []
    off = 0
    for r in in_rows:
        w_offs.append(off)
        off += r
    w_slab = jnp.concatenate(blocks, axis=0)                       # (sum rows, wcol)

    def pad_v(v):
        return jnp.pad(v, ((0, 0), (0, wcol - v.shape[1])))

    v_rows = [b1, g1, be1, b2, g2, be2, bmulv, b3, g3, be3, b4, g4, be4, b5]
    v_slab = jnp.concatenate([pad_v(v) for v in v_rows], axis=0)   # (14, wcol)
    v_slab = jnp.pad(
        v_slab, ((0, _round_up(v_slab.shape[0], 8) - v_slab.shape[0]), (0, 0)))

    meta = dict(w_offs=tuple(w_offs), in_rows=in_rows, wcol=wcol, in_pad=in_pad)
    return w_slab, v_slab, meta


# ----------------------------- wrapper ------------------------------------ #
def vae_forward(x, eps, params):
    """Full VAE forward pass in a single Pallas kernel.

    x:   (B, input_dim) float32
    eps: (B, 32)        float32 reparameterization noise
    params: flat tuple (see init_params)
    Returns (x_reconstructed, mu, log_var).
    """
    B, input_dim = x.shape
    output_dim = params[-2].shape[-1]

    w_slab, v_slab, meta = pack_params(params, input_dim, output_dim)
    wcol = meta["wcol"]
    if meta["in_pad"] != input_dim:
        x = jnp.pad(x, ((0, 0), (0, meta["in_pad"] - input_dim)))

    kernel = functools.partial(
        _vae_kernel, w_offs=meta["w_offs"], in_rows=meta["in_rows"])

    vmem = pl.BlockSpec(memory_space=pltpu.MemorySpace.VMEM)
    out = pl.pallas_call(
        kernel,
        out_shape=jax.ShapeDtypeStruct((B, wcol + 2 * LAT), jnp.float32),
        in_specs=[vmem, vmem, vmem, vmem],
        out_specs=vmem,
    )(x, eps, w_slab, v_slab)

    x_rec = out[:, :output_dim]
    mu = out[:, wcol:wcol + LAT]
    log_var = out[:, wcol + LAT:wcol + 2 * LAT]
    return x_rec, mu, log_var


# ----------------------------- params -------------------------------------- #
def init_params(key, input_dim, output_dim):
    """Deterministic synthetic parameters. Linear weights stored as
    (in_features, out_features); biases / BN params as (1, features)."""
    ks = jax.random.split(key, 16)

    def lin(k, fan_in, fan_out):
        bound = 1.0 / jnp.sqrt(fan_in)
        kw, kb = jax.random.split(k)
        w = jax.random.uniform(kw, (fan_in, fan_out), jnp.float32, -bound, bound)
        b = jax.random.uniform(kb, (1, fan_out), jnp.float32, -bound, bound)
        return w, b

    def bn(features):
        return jnp.ones((1, features), jnp.float32), jnp.zeros((1, features), jnp.float32)

    w1, b1 = lin(ks[0], input_dim, 64); g1, be1 = bn(64)
    w2, b2 = lin(ks[1], 64, 64);        g2, be2 = bn(64)
    wmu, bmu = lin(ks[2], 64, 32)
    wlv, blv = lin(ks[3], 64, 32)
    w3, b3 = lin(ks[4], 32, 64);        g3, be3 = bn(64)
    w4, b4 = lin(ks[5], 64, 64);        g4, be4 = bn(64)
    w5, b5 = lin(ks[6], 64, output_dim)

    return (w1, b1, g1, be1,
            w2, b2, g2, be2,
            wmu, bmu,
            wlv, blv,
            w3, b3, g3, be3,
            w4, b4, g4, be4,
            w5, b5)


# ----------------------------- reference ----------------------------------- #
def vae_reference(x, eps, params):
    (w1, b1, g1, be1, w2, b2, g2, be2, wmu, bmu, wlv, blv,
     w3, b3, g3, be3, w4, b4, g4, be4, w5, b5) = params

    def bnorm(h, g, be):
        m = jnp.mean(h, axis=0, keepdims=True)
        v = jnp.mean((h - m) ** 2, axis=0, keepdims=True)
        return g * (h - m) / jnp.sqrt(v + BN_EPS) + be

    def lrelu(h):
        return jnp.where(h >= 0, h, LEAKY_SLOPE * h)

    h = lrelu(bnorm(x @ w1 + b1, g1, be1))
    h = lrelu(bnorm(h @ w2 + b2, g2, be2))
    mu = h @ wmu + bmu
    log_var = h @ wlv + blv
    z = mu + eps * jnp.exp(0.5 * log_var)
    d = lrelu(bnorm(z @ w3 + b3, g3, be3))
    d = lrelu(bnorm(d @ w4 + b4, g4, be4))
    pre = d @ w5 + b5
    x_rec = jnp.where(pre > 20.0, pre, jnp.log1p(jnp.exp(jnp.minimum(pre, 20.0))))
    return x_rec, mu, log_var


# ----------------------------- main ----------------------------------------- #
if __name__ == "__main__":
    B = 8
    INPUT_DIM = 16
    OUTPUT_DIM = 16

    key = jax.random.PRNGKey(0)
    k_x, k_eps, k_params = jax.random.split(key, 3)

    x = jax.random.normal(k_x, (B, INPUT_DIM), jnp.float32)
    eps = jax.random.normal(k_eps, (B, 32), jnp.float32)
    params = init_params(k_params, INPUT_DIM, OUTPUT_DIM)

    x_rec, mu, log_var = jax.block_until_ready(vae_forward(x, eps, params))

    # sanity check against a pure-JAX reference
    x_rec_ref, mu_ref, lv_ref = vae_reference(x, eps, params)
    assert jnp.allclose(x_rec, x_rec_ref, atol=1e-4, rtol=1e-4)
    assert jnp.allclose(mu, mu_ref, atol=1e-4, rtol=1e-4)
    assert jnp.allclose(log_var, lv_ref, atol=1e-4, rtol=1e-4)
    assert x_rec.shape == (B, OUTPUT_DIM) and mu.shape == (B, 32) and log_var.shape == (B, 32)

    print("KERNEL_OK")
</pallas_src>

<mosaic_0001>
module attributes {stable_mosaic.version = 11 : i64} {
  func.func @_vae_kernel(%arg0: memref<8x16xf32, #tpu.memory_space<vmem>>, %arg1: memref<8x32xf32, #tpu.memory_space<vmem>>, %arg2: memref<304x64xf32, #tpu.memory_space<vmem>>, %arg3: memref<16x64xf32, #tpu.memory_space<vmem>>, %arg4: memref<8x128xf32, #tpu.memory_space<vmem>>) attributes {dimension_semantics = [], scalar_prefetch = 0 : i64, scratch_operands = 0 : i64, tpu.core_type = #tpu.core_type<tc>} {
    %c0 = arith.constant 0 : index
    %c0_0 = arith.constant 0 : index
    %0 = vector.load %arg0[%c0, %c0_0] : memref<8x16xf32, #tpu.memory_space<vmem>>, vector<8x16xf32>
    %c0_1 = arith.constant 0 : index
    %c0_2 = arith.constant 0 : index
    %1 = vector.load %arg1[%c0_1, %c0_2] : memref<8x32xf32, #tpu.memory_space<vmem>>, vector<8x32xf32>
    %c0_3 = arith.constant 0 : index
    %c0_4 = arith.constant 0 : index
    %2 = vector.load %arg3[%c0_3, %c0_4] : memref<16x64xf32, #tpu.memory_space<vmem>>, vector<16x64xf32>
    %c0_5 = arith.constant 0 : index
    %c0_6 = arith.constant 0 : index
    %3 = vector.load %arg2[%c0_5, %c0_6] : memref<304x64xf32, #tpu.memory_space<vmem>>, vector<16x64xf32>
    %cst = arith.constant dense<0.000000e+00> : vector<8x64xf32>
    %4 = tpu.matmul %0, %3, %cst {dimension_numbers = #tpu.dot_dimension_numbers<[1], [0], [0], [1], [0, 0, 1, 1], [], []>} : vector<8x16xf32>, vector<16x64xf32>, vector<8x64xf32> -> vector<8x64xf32>
    %5 = vector.extract_strided_slice %2 {offsets = [0, 0], sizes = [1, 64], strides = [1, 1]} : vector<16x64xf32> to vector<1x64xf32>
    %6 = vector.broadcast %5 : vector<1x64xf32> to vector<8x64xf32>
    %7 = arith.addf %4, %6 : vector<8x64xf32>
    %cst_7 = arith.constant dense<0.000000e+00> : vector<64xf32>
    %8 = vector.multi_reduction <add>, %7, %cst_7 [0] : vector<8x64xf32> to vector<64xf32>
    %9 = vector.shape_cast %8 : vector<64xf32> to vector<1x64xf32>
    %cst_8 = arith.constant 8.000000e+00 : f32
    %10 = vector.broadcast %cst_8 : f32 to vector<1x64xf32>
    %11 = arith.divf %9, %10 : vector<1x64xf32>
    %12 = arith.mulf %7, %7 : vector<8x64xf32>
    %cst_9 = arith.constant dense<0.000000e+00> : vector<64xf32>
    %13 = vector.multi_reduction <add>, %12, %cst_9 [0] : vector<8x64xf32> to vector<64xf32>
    %14 = vector.shape_cast %13 : vector<64xf32> to vector<1x64xf32>
    %cst_10 = arith.constant 8.000000e+00 : f32
    %15 = vector.broadcast %cst_10 : f32 to vector<1x64xf32>
    %16 = arith.divf %14, %15 : vector<1x64xf32>
    %17 = arith.mulf %11, %11 : vector<1x64xf32>
    %18 = arith.subf %16, %17 : vector<1x64xf32>
    %cst_11 = arith.constant 0.000000e+00 : f32
    %19 = vector.broadcast %cst_11 : f32 to vector<1x64xf32>
    %20 = arith.maximumf %18, %19 : vector<1x64xf32>
    %21 = vector.extract_strided_slice %2 {offsets = [1, 0], sizes = [1, 64], strides = [1, 1]} : vector<16x64xf32> to vector<1x64xf32>
    %22 = vector.extract_strided_slice %2 {offsets = [2, 0], sizes = [1, 64], strides = [1, 1]} : vector<16x64xf32> to vector<1x64xf32>
    %23 = vector.broadcast %11 : vector<1x64xf32> to vector<8x64xf32>
    %24 = arith.subf %7, %23 : vector<8x64xf32>
    %25 = vector.broadcast %21 : vector<1x64xf32> to vector<8x64xf32>
    %26 = arith.mulf %25, %24 : vector<8x64xf32>
    %cst_12 = arith.constant 9.99999974E-6 : f32
    %27 = vector.broadcast %cst_12 : f32 to vector<1x64xf32>
    %28 = arith.addf %20, %27 : vector<1x64xf32>
    %29 = math.rsqrt %28 : vector<1x64xf32>
    %30 = vector.broadcast %29 : vector<1x64xf32> to vector<8x64xf32>
    %31 = arith.mulf %26, %30 : vector<8x64xf32>
    %32 = vector.broadcast %22 : vector<1x64xf32> to vector<8x64xf32>
    %33 = arith.addf %31, %32 : vector<8x64xf32>
    %cst_13 = arith.constant 2.000000e-01 : f32
    %34 = vector.broadcast %cst_13 : f32 to vector<8x64xf32>
    %35 = arith.mulf %34, %33 : vector<8x64xf32>
    %36 = arith.maximumf %33, %35 : vector<8x64xf32>
    %c16 = arith.constant 16 : index
    %c0_14 = arith.constant 0 : index
    %37 = vector.load %arg2[%c16, %c0_14] : memref<304x64xf32, #tpu.memory_space<vmem>>, vector<64x64xf32>
    %cst_15 = arith.constant dense<0.000000e+00> : vector<8x64xf32>
    %38 = tpu.matmul %36, %37, %cst_15 {dimension_numbers = #tpu.dot_dimension_numbers<[1], [0], [0], [1], [0, 0, 1, 1], [], []>} : vector<8x64xf32>, vector<64x64xf32>, vector<8x64xf32> -> vector<8x64xf32>
    %39 = vector.extract_strided_slice %2 {offsets = [3, 0], sizes = [1, 64], strides = [1, 1]} : vector<16x64xf32> to vector<1x64xf32>
    %40 = vector.broadcast %39 : vector<1x64xf32> to vector<8x64xf32>
    %41 = arith.addf %38, %40 : vector<8x64xf32>
    %cst_16 = arith.constant dense<0.000000e+00> : vector<64xf32>
    %42 = vector.multi_reduction <add>, %41, %cst_16 [0] : vector<8x64xf32> to vector<64xf32>
    %43 = vector.shape_cast %42 : vector<64xf32> to vector<1x64xf32>
    %cst_17 = arith.constant 8.000000e+00 : f32
    %44 = vector.broadcast %cst_17 : f32 to vector<1x64xf32>
    %45 = arith.divf %43, %44 : vector<1x64xf32>
    %46 = arith.mulf %41, %41 : vector<8x64xf32>
    %cst_18 = arith.constant dense<0.000000e+00> : vector<64xf32>
    %47 = vector.multi_reduction <add>, %46, %cst_18 [0] : vector<8x64xf32> to vector<64xf32>
    %48 = vector.shape_cast %47 : vector<64xf32> to vector<1x64xf32>
    %cst_19 = arith.constant 8.000000e+00 : f32
    %49 = vector.broadcast %cst_19 : f32 to vector<1x64xf32>
    %50 = arith.divf %48, %49 : vector<1x64xf32>
    %51 = arith.mulf %45, %45 : vector<1x64xf32>
    %52 = arith.subf %50, %51 : vector<1x64xf32>
    %cst_20 = arith.constant 0.000000e+00 : f32
    %53 = vector.broadcast %cst_20 : f32 to vector<1x64xf32>
    %54 = arith.maximumf %52, %53 : vector<1x64xf32>
    %55 = vector.extract_strided_slice %2 {offsets = [4, 0], sizes = [1, 64], strides = [1, 1]} : vector<16x64xf32> to vector<1x64xf32>
    %56 = vector.extract_strided_slice %2 {offsets = [5, 0], sizes = [1, 64], strides = [1, 1]} : vector<16x64xf32> to vector<1x64xf32>
    %57 = vector.broadcast %45 : vector<1x64xf32> to vector<8x64xf32>
    %58 = arith.subf %41, %57 : vector<8x64xf32>
    %59 = vector.broadcast %55 : vector<1x64xf32> to vector<8x64xf32>
    %60 = arith.mulf %59, %58 : vector<8x64xf32>
    %cst_21 = arith.constant 9.99999974E-6 : f32
    %61 = vector.broadcast %cst_21 : f32 to vector<1x64xf32>
    %62 = arith.addf %54, %61 : vector<1x64xf32>
    %63 = math.rsqrt %62 : vector<1x64xf32>
    %64 = vector.broadcast %63 : vector<1x64xf32> to vector<8x64xf32>
    %65 = arith.mulf %60, %64 : vector<8x64xf32>
    %66 = vector.broadcast %56 : vector<1x64xf32> to vector<8x64xf32>
    %67 = arith.addf %65, %66 : vector<8x64xf32>
    %cst_22 = arith.constant 2.000000e-01 : f32
    %68 = vector.broadcast %cst_22 : f32 to vector<8x64xf32>
    %69 = arith.mulf %68, %67 : vector<8x64xf32>
    %70 = arith.maximumf %67, %69 : vector<8x64xf32>
    %c80 = arith.constant 80 : index
    %c0_23 = arith.constant 0 : index
    %71 = vector.load %arg2[%c80, %c0_23] : memref<304x64xf32, #tpu.memory_space<vmem>>, vector<64x64xf32>
    %cst_24 = arith.constant dense<0.000000e+00> : vector<8x64xf32>
    %72 = tpu.matmul %70, %71, %cst_24 {dimension_numbers = #tpu.dot_dimension_numbers<[1], [0], [0], [1], [0, 0, 1, 1], [], []>} : vector<8x64xf32>, vector<64x64xf32>, vector<8x64xf32> -> vector<8x64xf32>
    %73 = vector.extract_strided_slice %2 {offsets = [6, 0], sizes = [1, 64], strides = [1, 1]} : vector<16x64xf32> to vector<1x64xf32>
    %74 = vector.broadcast %73 : vector<1x64xf32> to vector<8x64xf32>
    %75 = arith.addf %72, %74 : vector<8x64xf32>
    %76 = vector.extract_strided_slice %75 {offsets = [0, 0], sizes = [8, 32], strides = [1, 1]} : vector<8x64xf32> to vector<8x32xf32>
    %77 = vector.extract_strided_slice %75 {offsets = [0, 32], sizes = [8, 32], strides = [1, 1]} : vector<8x64xf32> to vector<8x32xf32>
    %cst_25 = arith.constant 5.000000e-01 : f32
    %78 = vector.broadcast %cst_25 : f32 to vector<8x32xf32>
    %79 = arith.mulf %78, %77 : vector<8x32xf32>
    %80 = math.exp %79 : vector<8x32xf32>
    %81 = arith.mulf %1, %80 : vector<8x32xf32>
    %82 = arith.addf %76, %81 : vector<8x32xf32>
    %c144 = arith.constant 144 : index
    %c0_26 = arith.constant 0 : index
    %83 = vector.load %arg2[%c144, %c0_26] : memref<304x64xf32, #tpu.memory_space<vmem>>, vector<32x64xf32>
    %cst_27 = arith.constant dense<0.000000e+00> : vector<8x64xf32>
    %84 = tpu.matmul %82, %83, %cst_27 {dimension_numbers = #tpu.dot_dimension_numbers<[1], [0], [0], [1], [0, 0, 1, 1], [], []>} : vector<8x32xf32>, vector<32x64xf32>, vector<8x64xf32> -> vector<8x64xf32>
    %85 = vector.extract_strided_slice %2 {offsets = [7, 0], sizes = [1, 64], strides = [1, 1]} : vector<16x64xf32> to vector<1x64xf32>
    %86 = vector.broadcast %85 : vector<1x64xf32> to vector<8x64xf32>
    %87 = arith.addf %84, %86 : vector<8x64xf32>
    %cst_28 = arith.constant dense<0.000000e+00> : vector<64xf32>
    %88 = vector.multi_reduction <add>, %87, %cst_28 [0] : vector<8x64xf32> to vector<64xf32>
    %89 = vector.shape_cast %88 : vector<64xf32> to vector<1x64xf32>
    %cst_29 = arith.constant 8.000000e+00 : f32
    %90 = vector.broadcast %cst_29 : f32 to vector<1x64xf32>
    %91 = arith.divf %89, %90 : vector<1x64xf32>
    %92 = arith.mulf %87, %87 : vector<8x64xf32>
    %cst_30 = arith.constant dense<0.000000e+00> : vector<64xf32>
    %93 = vector.multi_reduction <add>, %92, %cst_30 [0] : vector<8x64xf32> to vector<64xf32>
    %94 = vector.shape_cast %93 : vector<64xf32> to vector<1x64xf32>
    %cst_31 = arith.constant 8.000000e+00 : f32
    %95 = vector.broadcast %cst_31 : f32 to vector<1x64xf32>
    %96 = arith.divf %94, %95 : vector<1x64xf32>
    %97 = arith.mulf %91, %91 : vector<1x64xf32>
    %98 = arith.subf %96, %97 : vector<1x64xf32>
    %cst_32 = arith.constant 0.000000e+00 : f32
    %99 = vector.broadcast %cst_32 : f32 to vector<1x64xf32>
    %100 = arith.maximumf %98, %99 : vector<1x64xf32>
    %101 = vector.extract_strided_slice %2 {offsets = [8, 0], sizes = [1, 64], strides = [1, 1]} : vector<16x64xf32> to vector<1x64xf32>
    %102 = vector.extract_strided_slice %2 {offsets = [9, 0], sizes = [1, 64], strides = [1, 1]} : vector<16x64xf32> to vector<1x64xf32>
    %103 = vector.broadcast %91 : vector<1x64xf32> to vector<8x64xf32>
    %104 = arith.subf %87, %103 : vector<8x64xf32>
    %105 = vector.broadcast %101 : vector<1x64xf32> to vector<8x64xf32>
    %106 = arith.mulf %105, %104 : vector<8x64xf32>
    %cst_33 = arith.constant 9.99999974E-6 : f32
    %107 = vector.broadcast %cst_33 : f32 to vector<1x64xf32>
    %108 = arith.addf %100, %107 : vector<1x64xf32>
    %109 = math.rsqrt %108 : vector<1x64xf32>
    %110 = vector.broadcast %109 : vector<1x64xf32> to vector<8x64xf32>
    %111 = arith.mulf %106, %110 : vector<8x64xf32>
    %112 = vector.broadcast %102 : vector<1x64xf32> to vector<8x64xf32>
    %113 = arith.addf %111, %112 : vector<8x64xf32>
    %cst_34 = arith.constant 2.000000e-01 : f32
    %114 = vector.broadcast %cst_34 : f32 to vector<8x64xf32>
    %115 = arith.mulf %114, %113 : vector<8x64xf32>
    %116 = arith.maximumf %113, %115 : vector<8x64xf32>
    %c176 = arith.constant 176 : index
    %c0_35 = arith.constant 0 : index
    %117 = vector.load %arg2[%c176, %c0_35] : memref<304x64xf32, #tpu.memory_space<vmem>>, vector<64x64xf32>
    %cst_36 = arith.constant dense<0.000000e+00> : vector<8x64xf32>
    %118 = tpu.matmul %116, %117, %cst_36 {dimension_numbers = #tpu.dot_dimension_numbers<[1], [0], [0], [1], [0, 0, 1, 1], [], []>} : vector<8x64xf32>, vector<64x64xf32>, vector<8x64xf32> -> vector<8x64xf32>
    %119 = vector.extract_strided_slice %2 {offsets = [10, 0], sizes = [1, 64], strides = [1, 1]} : vector<16x64xf32> to vector<1x64xf32>
    %120 = vector.broadcast %119 : vector<1x64xf32> to vector<8x64xf32>
    %121 = arith.addf %118, %120 : vector<8x64xf32>
    %cst_37 = arith.constant dense<0.000000e+00> : vector<64xf32>
    %122 = vector.multi_reduction <add>, %121, %cst_37 [0] : vector<8x64xf32> to vector<64xf32>
    %123 = vector.shape_cast %122 : vector<64xf32> to vector<1x64xf32>
    %cst_38 = arith.constant 8.000000e+00 : f32
    %124 = vector.broadcast %cst_38 : f32 to vector<1x64xf32>
    %125 = arith.divf %123, %124 : vector<1x64xf32>
    %126 = arith.mulf %121, %121 : vector<8x64xf32>
    %cst_39 = arith.constant dense<0.000000e+00> : vector<64xf32>
    %127 = vector.multi_reduction <add>, %126, %cst_39 [0] : vector<8x64xf32> to vector<64xf32>
    %128 = vector.shape_cast %127 : vector<64xf32> to vector<1x64xf32>
    %cst_40 = arith.constant 8.000000e+00 : f32
    %129 = vector.broadcast %cst_40 : f32 to vector<1x64xf32>
    %130 = arith.divf %128, %129 : vector<1x64xf32>
    %131 = arith.mulf %125, %125 : vector<1x64xf32>
    %132 = arith.subf %130, %131 : vector<1x64xf32>
    %cst_41 = arith.constant 0.000000e+00 : f32
    %133 = vector.broadcast %cst_41 : f32 to vector<1x64xf32>
    %134 = arith.maximumf %132, %133 : vector<1x64xf32>
    %135 = vector.extract_strided_slice %2 {offsets = [11, 0], sizes = [1, 64], strides = [1, 1]} : vector<16x64xf32> to vector<1x64xf32>
    %136 = vector.extract_strided_slice %2 {offsets = [12, 0], sizes = [1, 64], strides = [1, 1]} : vector<16x64xf32> to vector<1x64xf32>
    %137 = vector.broadcast %125 : vector<1x64xf32> to vector<8x64xf32>
    %138 = arith.subf %121, %137 : vector<8x64xf32>
    %139 = vector.broadcast %135 : vector<1x64xf32> to vector<8x64xf32>
    %140 = arith.mulf %139, %138 : vector<8x64xf32>
    %cst_42 = arith.constant 9.99999974E-6 : f32
    %141 = vector.broadcast %cst_42 : f32 to vector<1x64xf32>
    %142 = arith.addf %134, %141 : vector<1x64xf32>
    %143 = math.rsqrt %142 : vector<1x64xf32>
    %144 = vector.broadcast %143 : vector<1x64xf32> to vector<8x64xf32>
    %145 = arith.mulf %140, %144 : vector<8x64xf32>
    %146 = vector.broadcast %136 : vector<1x64xf32> to vector<8x64xf32>
    %147 = arith.addf %145, %146 : vector<8x64xf32>
    %cst_43 = arith.constant 2.000000e-01 : f32
    %148 = vector.broadcast %cst_43 : f32 to vector<8x64xf32>
    %149 = arith.mulf %148, %147 : vector<8x64xf32>
    %150 = arith.maximumf %147, %149 : vector<8x64xf32>
    %c240 = arith.constant 240 : index
    %c0_44 = arith.constant 0 : index
    %151 = vector.load %arg2[%c240, %c0_44] : memref<304x64xf32, #tpu.memory_space<vmem>>, vector<64x64xf32>
    %cst_45 = arith.constant dense<0.000000e+00> : vector<8x64xf32>
    %152 = tpu.matmul %150, %151, %cst_45 {dimension_numbers = #tpu.dot_dimension_numbers<[1], [0], [0], [1], [0, 0, 1, 1], [], []>} : vector<8x64xf32>, vector<64x64xf32>, vector<8x64xf32> -> vector<8x64xf32>
    %153 = vector.extract_strided_slice %2 {offsets = [13, 0], sizes = [1, 64], strides = [1, 1]} : vector<16x64xf32> to vector<1x64xf32>
    %154 = vector.broadcast %153 : vector<1x64xf32> to vector<8x64xf32>
    %155 = arith.addf %152, %154 : vector<8x64xf32>
    %cst_46 = arith.constant 2.000000e+01 : f32
    %156 = vector.broadcast %cst_46 : f32 to vector<8x64xf32>
    %157 = arith.minimumf %155, %156 : vector<8x64xf32>
    %cst_47 = arith.constant 2.000000e+01 : f32
    %158 = vector.broadcast %cst_47 : f32 to vector<8x64xf32>
    %159 = arith.cmpf ogt, %155, %158 : vector<8x64xf32>
    %160 = math.exp %157 : vector<8x64xf32>
    %161 = math.log1p %160 : vector<8x64xf32>
    %162 = arith.select %159, %155, %161 : vector<8x64xi1>, vector<8x64xf32>
    %163 = tpu.concatenate %162, %75 in 1 : vector<8x64xf32>, vector<8x64xf32> -> vector<8x128xf32>
    %c0_48 = arith.constant 0 : index
    %c0_49 = arith.constant 0 : index
    %164 = vector.load %arg4[%c0_48, %c0_49] : memref<8x128xf32, #tpu.memory_space<vmem>>, vector<8x128xf32>
    tpu.vector_store %arg4[%c0_48, %c0_49], %163 {strides = array<i32>} : memref<8x128xf32, #tpu.memory_space<vmem>>, vector<8x128xf32>,
    return
  }
}

</mosaic_0001>

<bundles_post_ra>
// kernel: tpu_custom_call.1
= control target key start
LH: loop header
LB: loop body
LE: loop exit
PB: predicated region body
PF: predicated region fallthrough
CT: control target
= control target key end

     0   :  { %v958_v2 = vmov 0.0|0.0   ;;  %vm959_vm0 = vmmov 0   ;;  %v960_v4 = vmov 0.0   ;;  %s1223_s0 = inlined_call_operand.vmem [shape: f32[8,16], index: 0, kind: input, shape index: {}]   ;;  %s1224_s1 = inlined_call_operand.vmem [shape: f32[8,32], index: 1, kind: input, shape index: {}]   ;;  %s1225_s2 = inlined_call_operand.vmem [shape: f32[304,64], index: 2, kind: input, shape index: {}]   ;;  %s1226_s3 = inlined_call_operand.vmem [shape: f32[16,64], index: 3, kind: input, shape index: {}]   ;;  %s1227_s4 = inlined_call_operand.hbm [shape: f32[8,128], index: 4, kind: output, shape index: {}]  }
   0x1   :  { %v22_v0 = vld [vmem:[%s1225_s2] sm:$0xff]  ;;  %v23_v1 = vld [vmem:[%s1225_s2 + $0x8] sm:$0xff]  ;;  %857 = vmatprep.subr.bf16.mxu0 %v958_v2  ;;  %767 = vmatprep.mubr.msk.f32.mxu0 %vm959_vm0, %v960_v4 }
   0x2   :  { %v858_v3 = vpack.c.bf16 %v23_v1, %v22_v0 }
   0x3   :  { %9 = vsyncpa [#allocation3], 0  ;;  %860 = vmatprep.subr.bf16.mxu1 %v958_v2  ;;  %786 = vmatprep.mubr.msk.f32.mxu1 %vm959_vm0, %v960_v4  ;;  %v18_v5 = vld [vmem:[%s1223_s0] sm:$0xff]  ;;  %vm28_vm1 = vcmask 130048   ;;  %v140_v6 = vld [vmem:[%s1225_s2 + $0x10] sm:$0xff]  ;;  %v24_v18 = vlaneseq  ;;  %vm102_vm2 = vcmask 523264  }
   0x4   :  { %859 = vmatpush3.bf16.msra.mxu0 %v858_v3  ;;  %v141_v7 = vld [vmem:[%s1225_s2 + $0x18] sm:$0xff]  ;;  %v142_v9 = vld [vmem:[%s1225_s2 + $0x20] sm:$0xff]  ;;  %v143_v10 = vld [vmem:[%s1225_s2 + $0x28] sm:$0xff]  ;;  %s961_s9 = smov 96   ;;  %s962_s10 = smov 64   ;;  %vm363_vm3 = vcmask 261120  }
   0x5   :  { %872 = vmatprep.subr.bf16.mxu0 %v958_v2  ;;  %v861_v8 = vpack.c.bf16 %v141_v7, %v140_v6  ;;  %v864_v11 = vpack.c.bf16 %v143_v10, %v142_v9  ;;  %v144_v12 = vld [vmem:[%s1225_s2 + $0x30] sm:$0xff]  ;;  %v145_v13 = vld [vmem:[%s1225_s2 + $0x38] sm:$0xff]  ;;  %v146_v15 = vld [vmem:[%s1225_s2 + $0x40] sm:$0xff]  ;;  %v1035_v19 = vshrl.u32 %v24_v18, 7 }
   0x6   :  { %v867_v14 = vpack.c.bf16 %v145_v13, %v144_v12  ;;  %v147_v16 = vld [vmem:[%s1225_s2 + $0x48] sm:$0xff]  ;;  %v1041_v21 = vld [vmem:[%s1226_s3] sm:$0xff]  ;;  %v261_v58 = vld [vmem:[%s1225_s2 + $0x50] sm:$0xff] }
   0x7   :  { %768 = vmatmul.mubr.msk.f32.vlgmr.msra.gmra.mrb[0].mxu0 %vm28_vm1, %v18_v5  ;;  %862 = vmatpush3.bf16.msra.mxu1 %v861_v8  ;;  %v870_v17 = vpack.c.bf16 %v147_v16, %v146_v15  ;;  %v26_v20 = vsub.s32 0, %v1035_v19  ;;  %v127_v47 = vsub.s32 1, %v1035_v19  ;;  %v135_v50 = vsub.s32 2, %v1035_v19  ;;  %v262_v59 = vld [vmem:[%s1225_s2 + $0x58] sm:$0xff]  ;;  %v263_v61 = vld [vmem:[%s1225_s2 + $0x60] sm:$0xff]  ;;  %v264_v62 = vld [vmem:[%s1225_s2 + $0x68] sm:$0xff] }
   0x8   :  { %805 = vmatprep.mubr.msk.f32.mxu0 %vm959_vm0, %v960_v4  ;;  %863 = vmatprep.subr.bf16.mxu1 %v958_v2  ;;  %v873_v60 = vpack.c.bf16 %v262_v59, %v261_v58  ;;  %v876_v63 = vpack.c.bf16 %v264_v62, %v263_v61  ;;  %v265_v0 = vld [vmem:[%s1225_s2 + $0x70] sm:$0xff]  ;;  %v266_v1 = vld [vmem:[%s1225_s2 + $0x78] sm:$0xff]  ;;  %v267_v5 = vld [vmem:[%s1225_s2 + $0x80] sm:$0xff]  ;;  %v150_v8 = vsub.s32 3, %v1035_v19 }
   0x9   :  { %v27_v22 = vrot.slane %v1041_v21, %v26_v20  ;;  %v128_v49 = vrot.slane %v1041_v21, %v127_v47  ;;  %v136_v52 = vrot.slane %v1041_v21, %v135_v50  ;;  %v879_v3 = vpack.c.bf16 %v266_v1, %v265_v0  ;;  %v268_v6 = vld [vmem:[%s1225_s2 + $0x88] sm:$0xff]  ;;  %v357_v59 = vld [vmem:[%s1225_s2 + $0xa0] sm:$0xff] }
   0xa   :  { %874 = vmatpush3.bf16.msra.mxu0 %v873_v60  ;;  %v882_v7 = vpack.c.bf16 %v268_v6, %v267_v5  ;;  %v151_v9 = vrot.slane %v1041_v21, %v150_v8  ;;  %v358_v60 = vld [vmem:[%s1225_s2 + $0xa8] sm:$0xff]  ;;  %v19_v0 = vld [vmem:[%s1224_s1] sm:$0xff]  ;;  %v473_v6 = vld [vmem:[%s1225_s2 + $0xb0] sm:$0xff] }
   0xb   :  { %865 = vmatpush3.bf16.msra.mxu1 %v864_v11  ;;  %875 = vmatprep.subr.bf16.mxu0 %v958_v2  ;;  %v888_v61 = vpack.c.bf16 %v358_v60, %v357_v59  ;;  %v594_v60 = vld [vmem:[%s1225_s2 + $0xf0] sm:$0xff] }
   0xc   :  { %866 = vmatprep.subr.bf16.mxu1 %v958_v2 }
   0xe   :  { %877 = vmatpush3.bf16.msra.mxu0 %v876_v63 }
   0xf   :  { %868 = vmatpush3.bf16.msra.mxu1 %v867_v14  ;;  %878 = vmatprep.subr.bf16.mxu0 %v958_v2 }
  0x10   :  { %869 = vmatprep.subr.bf16.mxu1 %v958_v2 }
  0x12   :  { %880 = vmatpush3.bf16.msra.mxu0 %v879_v3 }
  0x13   :  { %871 = vmatpush3.bf16.msra.mxu1 %v870_v17  ;;  %881 = vmatprep.subr.bf16.mxu0 %v958_v2 }
  0x14   :  { %884 = vmatprep.subr.bf16.mxu1 %v958_v2 }
  0x16   :  { %883 = vmatpush3.bf16.msra.mxu0 %v882_v7  ;;  %v474_v7 = vld [vmem:[%s1225_s2 + $0xb8] sm:$0xff] }
  0x17   :  { %890 = vmatprep.subr.bf16.mxu0 %v958_v2 }
  0xda   :  { %v98_v23 = vpop.f32.mrb[0].mxu0 }
  0xdb   :  { %v99_v24 = vadd.f32 %v98_v23, %v27_v22  ;;  %v769_v25 = vpop.f32.mrb[1].mxu0 }
  0xdd   :  { %v103_v26 = vsel %vm102_vm2, %v99_v24, 0.0  ;;  %v112_v27 = vmul.f32 %v99_v24, %v99_v24 }
  0xde   :  { %v104_v28 = vrot.slane %v103_v26, 4 }
  0xdf   :  { %v113_v29 = vsel %vm102_vm2, %v112_v27, 0.0 }
  0xe0   :  { %v105_v30 = vadd.f32 %v104_v28, %v103_v26  ;;  %v114_v31 = vrot.slane %v113_v29, 4 }
  0xe2   :  { %v106_v32 = vrot.slane %v105_v30, 2  ;;  %v115_v33 = vadd.f32 %v114_v31, %v113_v29 }
  0xe4   :  { %v107_v34 = vadd.f32 %v106_v32, %v105_v30  ;;  %v116_v35 = vrot.slane %v115_v33, 2 }
  0xe6   :  { %v108_v36 = vrot.slane %v107_v34, 1  ;;  %v117_v37 = vadd.f32 %v116_v35, %v115_v33 }
  0xe8   :  { %v109_v38 = vadd.f32 %v108_v36, %v107_v34  ;;  %v118_v39 = vrot.slane %v117_v37, 1 }
  0xea   :  { %v111_v40 = vmul.f32 0.125, %v109_v38  ;;  %v119_v41 = vadd.f32 %v118_v39, %v117_v37  ;;  %v248_v37 = vsub.s32 4, %v1035_v19 }
  0xec   :  { %v120_v42 = vmul.f32 0.125, %v119_v41  ;;  %v121_v43 = vmul.f32 %v111_v40, %v111_v40  ;;  %v124_v48 = vsub.f32 %v99_v24, %v111_v40  ;;  %v249_v39 = vrot.slane %v1041_v21, %v248_v37 }
  0xed   :  { %v256_v40 = vsub.s32 5, %v1035_v19 }
  0xee   :  { %v122_v44 = vsub.f32 %v120_v42, %v121_v43  ;;  %v129_v51 = vmul.f32 %v128_v49, %v124_v48  ;;  %v355_v49 = vld [vmem:[%s1225_s2 + $0x90] sm:$0xff] }
  0xef   :  { %v257_v42 = vrot.slane %v1041_v21, %v256_v40 }
  0xf0   :  { %v123_v45 = vmax.f32 %v122_v44, 0.0 }
  0xf2   :  { %v130_v46 = vadd.f32 1e-05, %v123_v45 }
  0xf4   :  { %920 = vrsqrt.f32 %v130_v46 }
  0xfe   :  { %v921_v53 = vpop.eup %920 }
  0xff   :  { %v132_v54 = vmul.f32 %v921_v53, %v129_v51  ;;  %v356_v51 = vld [vmem:[%s1225_s2 + $0x98] sm:$0xff]  ;;  %v271_v53 = vsub.s32 6, %v1035_v19 }
 0x101   :  { %v137_v55 = vadd.f32 %v136_v52, %v132_v54  ;;  %v885_v52 = vpack.c.bf16 %v356_v51, %v355_v49  ;;  %v272_v54 = vrot.slane %v1041_v21, %v271_v53  ;;  %v1159_v49 = vld [vmem:[%s1226_s3 + $0x8] sm:$0xff] }
 0x102   :  { %v461_v51 = vrot.slane %v1159_v49, %v26_v20  ;;  %v595_v20 = vld [vmem:[%s1225_s2 + $0xf8] sm:$0xff] }
 0x103   :  { %v138_v56 = vmul.f32 0.2, %v137_v55 }
 0x105   :  { %v139_v57 = vmax.f32 %v137_v55, %v138_v56 }
 0x107   :  { %787 = vmatmul.mubr.msk.f32.vlgmr.msra.gmra.mrb[0].mxu1 %vm102_vm2, %v139_v57 }
 0x108   :  { %816 = vmatprep.mubr.msk.f32.mxu1 %vm959_vm0, %v960_v4  ;;  %886 = vmatpush3.bf16.msra.mxu1 %v885_v52 }
 0x109   :  { %887 = vmatprep.subr.bf16.mxu1 %v958_v2 }
 0x10c   :  { %889 = vmatpush3.bf16.msra.mxu1 %v888_v61  ;;  %v903_v61 = vpack.c.bf16 %v595_v20, %v594_v60 }
 0x10d   :  { %902 = vmatprep.subr.bf16.mxu1 %v958_v2 }
 0x1da   :  { %v221_v10 = vpop.f32.mrb[0].mxu1 }
 0x1db   :  { %v222_v11 = vadd.f32 %v221_v10, %v151_v9  ;;  %v788_v12 = vpop.f32.mrb[1].mxu1  ;;  %v891_v9 = vpack.c.bf16 %v474_v7, %v473_v6  ;;  %v475_v10 = vld [vmem:[%s1225_s2 + $0xc0] sm:$0xff]  ;;  %v601_v6 = vld [vmem:[%s1225_s2 + $0x128] sm:$0xff] }
 0x1dc   :  { %v477_v12 = vld [vmem:[%s1225_s2 + $0xd0] sm:$0xff] }
 0x1dd   :  { %v225_v13 = vsel %vm102_vm2, %v222_v11, 0.0  ;;  %v233_v14 = vmul.f32 %v222_v11, %v222_v11 }
 0x1de   :  { %v226_v15 = vrot.slane %v225_v13, 4 }
 0x1df   :  { %v234_v16 = vsel %vm102_vm2, %v233_v14, 0.0 }
 0x1e0   :  { %v227_v17 = vadd.f32 %v226_v15, %v225_v13  ;;  %v235_v18 = vrot.slane %v234_v16, 4  ;;  %v478_v13 = vld [vmem:[%s1225_s2 + $0xd8] sm:$0xff]  ;;  %v479_v15 = vld [vmem:[%s1225_s2 + $0xe0] sm:$0xff] }
 0x1e1   :  { %v897_v14 = vpack.c.bf16 %v478_v13, %v477_v12 }
 0x1e2   :  { %v228_v22 = vrot.slane %v227_v17, 2  ;;  %v236_v23 = vadd.f32 %v235_v18, %v234_v16  ;;  %v480_v16 = vld [vmem:[%s1225_s2 + $0xe8] sm:$0xff]  ;;  %v361_v18 = vsub.s32 7, %v1035_v19 }
 0x1e4   :  { %v229_v24 = vadd.f32 %v228_v22, %v227_v17  ;;  %v237_v25 = vrot.slane %v236_v23, 2  ;;  %v900_v17 = vpack.c.bf16 %v480_v16, %v479_v15  ;;  %v362_v22 = vrot.slane %v1041_v21, %v361_v18 }
 0x1e6   :  { %v230_v26 = vrot.slane %v229_v24, 1  ;;  %v238_v27 = vadd.f32 %v237_v25, %v236_v23 }
 0x1e8   :  { %v231_v28 = vadd.f32 %v230_v26, %v229_v24  ;;  %v239_v29 = vrot.slane %v238_v27, 1 }
 0x1ea   :  { %v232_v30 = vmul.f32 0.125, %v231_v28  ;;  %v240_v31 = vadd.f32 %v239_v29, %v238_v27 }
 0x1ec   :  { %v241_v32 = vmul.f32 0.125, %v240_v31  ;;  %v242_v33 = vmul.f32 %v232_v30, %v232_v30  ;;  %v245_v38 = vsub.f32 %v222_v11, %v232_v30 }
 0x1ee   :  { %v243_v34 = vsub.f32 %v241_v32, %v242_v33  ;;  %v250_v41 = vmul.f32 %v249_v39, %v245_v38 }
 0x1f0   :  { %v244_v35 = vmax.f32 %v243_v34, 0.0 }
 0x1f2   :  { %v251_v36 = vadd.f32 1e-05, %v244_v35 }
 0x1f4   :  { %922 = vrsqrt.f32 %v251_v36 }
 0x1fe   :  { %v923_v43 = vpop.eup %922 }
 0x1ff   :  { %v253_v44 = vmul.f32 %v923_v43, %v250_v41 }
 0x201   :  { %v258_v45 = vadd.f32 %v257_v42, %v253_v44 }
 0x203   :  { %v259_v46 = vmul.f32 0.2, %v258_v45 }
 0x205   :  { %v260_v48 = vmax.f32 %v258_v45, %v259_v46 }
 0x207   :  { %806 = vmatmul.mubr.msk.f32.vlgmr.msra.gmra.mrb[2].mxu0 %vm102_vm2, %v260_v48 }
 0x208   :  { %835 = vmatprep.mubr.msk.f32.mxu0 %vm959_vm0, %v960_v4  ;;  %892 = vmatpush3.bf16.msra.mxu0 %v891_v9  ;;  %v484_v9 = vrot.slane %v1159_v49, %v135_v50 }
 0x209   :  { %893 = vmatprep.subr.bf16.mxu0 %v958_v2 }
 0x2da   :  { %v342_v55 = vpop.f32.mrb[2].mxu0 }
 0x2db   :  { %v343_v56 = vadd.f32 %v342_v55, %v272_v54  ;;  %v807_v57 = vpop.f32.mrb[3].mxu0  ;;  %v469_v54 = vrot.slane %v1159_v49, %v127_v47  ;;  %v596_v47 = vld [vmem:[%s1225_s2 + $0x100] sm:$0xff] }
 0x2dd   :  { %v346_v58 = vmul.f32 0.5, %v343_v56 }
 0x2df   :  { %v347_v62 = vmul.f32 1.442695, %v346_v58 }
 0x2e1   :  { %924 = vpow2.f32 %v347_v62  ;;  %v597_v62 = vld [vmem:[%s1225_s2 + $0x108] sm:$0xff] }
 0x2eb   :  { %v925_v63 = vpop.eup %924 }
 0x2ec   :  { %350 = vrot.lane.b32.xlu0 %v925_v63, %s961_s9  ;;  %v906_v63 = vpack.c.bf16 %v597_v62, %v596_v47 }
 0x2f0   :  { %694 = vrot.lane.b32.xlu0 %v343_v56, %s962_s10 }
 0x35e   :  { %v351_v1 = vpop.permute.xlu0 %350 }
 0x35f   :  { %v353_v3 = vmul.f32 %v351_v1, %v19_v0  ;;  %v598_v0 = vld [vmem:[%s1225_s2 + $0x110] sm:$0xff]  ;;  %v599_v1 = vld [vmem:[%s1225_s2 + $0x118] sm:$0xff] }
 0x361   :  { %v354_v5 = vadd.f32 %v353_v3, %v343_v56  ;;  %v909_v3 = vpack.c.bf16 %v599_v1, %v598_v0 }
 0x363   :  { %817 = vmatmul.mubr.msk.f32.vlgmr.msra.gmra.mrb[2].mxu1 %vm363_vm3, %v354_v5  ;;  %v600_v5 = vld [vmem:[%s1225_s2 + $0x120] sm:$0xff] }
 0x364   :  { %854 = vmatprep.mubr.msk.f32.mxu1 %vm959_vm0, %v960_v4  ;;  %v476_v4 = vld [vmem:[%s1225_s2 + $0xc8] sm:$0xff]  ;;  %904 = vmatpush3.bf16.msra.mxu1 %v903_v61  ;;  %v912_v7 = vpack.c.bf16 %v601_v6, %v600_v5  ;;  %s963_s2 = smov [#allocation2]  }
 0x365   :  { %v894_v11 = vpack.c.bf16 %v476_v4, %v475_v10  ;;  %905 = vmatprep.subr.bf16.mxu1 %v958_v2  ;;  %s705_s17 = sshll.u32 %s963_s2, 4  ;;  %s706_s17 = int_to_ptr.vmem [resolvable:$true] %s705_s17 }
 0x366   :  { %s934_s18 = scalar_lea.vmem %s706_s17, 128  ;;  %p939_p1 = scmp.lt.s32.totalorder %s706_s17, %s706_s17 }
 0x367   :  { %895 = vmatpush3.bf16.msra.mxu0 %v894_v11  ;;  %p935_p0 = scmp.ne.s32.totalorder %s706_s17, %s934_s18  ;;  %p940_p2 = scmp.lt.s32.totalorder %s934_s18, %s934_s18 }
 0x368   :  { %896 = vmatprep.subr.bf16.mxu0 %v958_v2  ;;  %907 = vmatpush3.bf16.msra.mxu1 %v906_v63 }
 0x369   :  { %908 = vmatprep.subr.bf16.mxu1 %v958_v2  ;;  %p941_p3 = por %p940_p2, %p939_p1 }
 0x36b   :  { %898 = vmatpush3.bf16.msra.mxu0 %v897_v14  ;;  %p942_p4 = pnand %p941_p3, %p935_p0 }
 0x36c   :  { %899 = vmatprep.subr.bf16.mxu0 %v958_v2  ;;  %910 = vmatpush3.bf16.msra.mxu1 %v909_v3 }
 0x36d   :  { %911 = vmatprep.subr.bf16.mxu1 %v958_v2 }
 0x36f   :  { %901 = vmatpush3.bf16.msra.mxu0 %v900_v17 }
 0x370   :  { %913 = vmatpush3.bf16.msra.mxu1 %v912_v7 }
 0x436   :  { %v433_v23 = vpop.f32.mrb[2].mxu1 }
 0x437   :  { %v434_v24 = vadd.f32 %v433_v23, %v362_v22  ;;  %v818_v25 = vpop.f32.mrb[3].mxu1 }
 0x439   :  { %v437_v26 = vsel %vm102_vm2, %v434_v24, 0.0  ;;  %v445_v27 = vmul.f32 %v434_v24, %v434_v24 }
 0x43a   :  { %v438_v28 = vrot.slane %v437_v26, 4 }
 0x43b   :  { %v446_v29 = vsel %vm102_vm2, %v445_v27, 0.0 }
 0x43c   :  { %v439_v30 = vadd.f32 %v438_v28, %v437_v26  ;;  %v447_v31 = vrot.slane %v446_v29, 4 }
 0x43e   :  { %v440_v32 = vrot.slane %v439_v30, 2  ;;  %v448_v33 = vadd.f32 %v447_v31, %v446_v29 }
 0x440   :  { %v441_v34 = vadd.f32 %v440_v32, %v439_v30  ;;  %v449_v35 = vrot.slane %v448_v33, 2 }
 0x442   :  { %v442_v36 = vrot.slane %v441_v34, 1  ;;  %v450_v38 = vadd.f32 %v449_v35, %v448_v33 }
 0x444   :  { %v443_v39 = vadd.f32 %v442_v36, %v441_v34  ;;  %v451_v41 = vrot.slane %v450_v38, 1  ;;  %v582_v34 = vrot.slane %v1159_v49, %v150_v8 }
 0x446   :  { %v444_v21 = vmul.f32 0.125, %v443_v39  ;;  %v452_v42 = vadd.f32 %v451_v41, %v450_v38  ;;  %v590_v38 = vrot.slane %v1159_v49, %v248_v37 }
 0x448   :  { %v453_v43 = vmul.f32 0.125, %v452_v42  ;;  %v454_v44 = vmul.f32 %v444_v21, %v444_v21  ;;  %v457_v52 = vsub.f32 %v434_v24, %v444_v21 }
 0x44a   :  { %v455_v45 = vsub.f32 %v453_v43, %v454_v44  ;;  %v462_v53 = vmul.f32 %v461_v51, %v457_v52  ;;  %v605_v44 = vrot.slane %v1159_v49, %v256_v40  ;;  %v695_v40 = vpop.permute.xlu0 %694 }
 0x44c   :  { %v456_v46 = vmax.f32 %v455_v45, 0.0 }
 0x44e   :  { %v463_v48 = vadd.f32 1e-05, %v456_v46 }
 0x450   :  { %926 = vrsqrt.f32 %v463_v48 }
 0x45a   :  { %v927_v55 = vpop.eup %926 }
 0x45b   :  { %v465_v56 = vmul.f32 %v927_v55, %v462_v53 }
 0x45d   :  { %v470_v57 = vadd.f32 %v469_v54, %v465_v56 }
 0x45f   :  { %v471_v58 = vmul.f32 0.2, %v470_v57 }
 0x461   :  { %v472_v59 = vmax.f32 %v470_v57, %v471_v58 }
 0x463   :  { %836 = vmatmul.mubr.msk.f32.vlgmr.msra.gmra.mrb[4].mxu0 %vm102_vm2, %v472_v59 }
 0x536   :  { %v554_v10 = vpop.f32.mrb[4].mxu0 }
 0x537   :  { %v555_v4 = vadd.f32 %v554_v10, %v484_v9  ;;  %v837_v11 = vpop.f32.mrb[5].mxu0 }
 0x539   :  { %v558_v12 = vsel %vm102_vm2, %v555_v4, 0.0  ;;  %v566_v2 = vmul.f32 %v555_v4, %v555_v4 }
 0x53a   :  { %v559_v13 = vrot.slane %v558_v12, 4 }
 0x53b   :  { %v567_v14 = vsel %vm102_vm2, %v566_v2, 0.0 }
 0x53c   :  { %v560_v15 = vadd.f32 %v559_v13, %v558_v12  ;;  %v568_v16 = vrot.slane %v567_v14, 4 }
 0x53e   :  { %v561_v17 = vrot.slane %v560_v15, 2  ;;  %v569_v18 = vadd.f32 %v568_v16, %v567_v14 }
 0x540   :  { %v562_v22 = vadd.f32 %v561_v17, %v560_v15  ;;  %v570_v23 = vrot.slane %v569_v18, 2 }
 0x542   :  { %v563_v24 = vrot.slane %v562_v22, 1  ;;  %v571_v25 = vadd.f32 %v570_v23, %v569_v18 }
 0x544   :  { %v564_v26 = vadd.f32 %v563_v24, %v562_v22  ;;  %v572_v27 = vrot.slane %v571_v25, 1 }
 0x546   :  { %v565_v50 = vmul.f32 0.125, %v564_v26  ;;  %v573_v28 = vadd.f32 %v572_v27, %v571_v25 }
 0x548   :  { %v574_v29 = vmul.f32 0.125, %v573_v28  ;;  %v575_v30 = vmul.f32 %v565_v50, %v565_v50  ;;  %v578_v35 = vsub.f32 %v555_v4, %v565_v50 }
 0x54a   :  { %v576_v31 = vsub.f32 %v574_v29, %v575_v30  ;;  %v583_v36 = vmul.f32 %v582_v34, %v578_v35 }
 0x54c   :  { %v577_v32 = vmax.f32 %v576_v31, 0.0 }
 0x54e   :  { %v584_v33 = vadd.f32 1e-05, %v577_v32 }
 0x550   :  { %928 = vrsqrt.f32 %v584_v33 }
 0x55a   :  { %v929_v39 = vpop.eup %928 }
 0x55b   :  { %v586_v41 = vmul.f32 %v929_v39, %v583_v36 }
 0x55d   :  { %v591_v21 = vadd.f32 %v590_v38, %v586_v41 }
 0x55f   :  { %v592_v42 = vmul.f32 0.2, %v591_v21 }
 0x561   :  { %v593_v43 = vmax.f32 %v591_v21, %v592_v42 }
 0x563   :  { %855 = vmatmul.mubr.msk.f32.vlgmr.msra.gmra.mrb[4].mxu1 %vm102_vm2, %v593_v43 }
 0x636   :  { %v675_v45 = vpop.f32.mrb[4].mxu1 }
 0x637   :  { %v676_v46 = vadd.f32 %v675_v45, %v605_v44  ;;  %v856_v8 = vpop.f32.mrb[5].mxu1 }
 0x639   :  { %v679_v48 = vmin.f32 %v676_v46, 20.0  ;;  %vm680_vm5 = vcmp.gt.f32.partialorder %v676_v46, 20.0 }
 0x63b   :  { %v681_v51 = vmul.f32 1.442695, %v679_v48 }
 0x63d   :  { %930 = vpow2.f32 %v681_v51 }
 0x647   :  { %v931_v52 = vpop.eup %930 }
 0x648   :  { %v683_v53 = vadd.f32 1.0, %v931_v52  ;;  %v686_v37 = vmul.f32 -0.5, %v931_v52  ;;  %v689_v55 = vand.u32 2147483647, %v931_v52 }
 0x64a   :  { %932 = vlog2.f32 %v683_v53  ;;  %v687_v54 = vadd.f32 1.0, %v686_v37  ;;  %vm690_vm4 = vcmp.lt.f32.partialorder %v689_v55, 0.0004427343 }
 0x64c   :  { %v688_v58 = vmul.f32 %v931_v52, %v687_v54 }
 0x654   :  { %v933_v56 = vpop.eup %932 }
 0x655   :  { %v685_v57 = vmul.f32 0.6931472, %v933_v56 }
 0x657   :  { %v691_v19 = vsel %vm690_vm4, %v688_v58, %v685_v57 }
 0x658   :  { %v692_v49 = vsel %vm680_vm5, %v676_v46, %v691_v19 }
 0x659   :  { %v697_v59 = vsel %vm102_vm2, %v692_v49, %v695_v40 }
 0x65a   :  { %698 = vst [vmem:[#allocation2] sm:$0xff] %v697_v59 }
 0x65b   :  { %945 = shalt.err (!%p942_p4)
}
 0x65c   :  { %s946_s21 = scalar_lea.hbm %s1227_s4, 128 }
 0x65d   :  { %p947_p5 = scmp.ne.s32.totalorder %s1227_s4, %s946_s21  ;;  %p950_p6 = scmp.lt.u32.totalorder %s946_s21, %s1227_s4 }
 0x65f   :  { %p952_p7 = pnand %p950_p6, %p947_p5 }
 0x661   :  { %955 = shalt.err (!%p952_p7)
}
 0x662   :  { %708 = dma.vmem_to_hbm [thread:$0]  %s706_s17, 128, %s1227_s4, [#allocation3]  }
 0x663   :  { %956 = dma.done.wait [#allocation3], 128  }
 0x664   :  { %957 = vsyncadd [#allocation3], 4294967168 }
 0x665   :  { %712 = vsyncpa [#allocation3], 1 }

</bundles_post_ra>
